<compile_context>
chip_gen: v6e
topology: v6e:2x2x1
jax: 0.10.0
libtpu: 0.0.40
codegen_flags: <defaults>
</compile_context>

<pallas_src>
import math
import functools

import jax
import jax.numpy as jnp
from jax.experimental import pallas as pl
from jax.experimental.pallas import tpu as pltpu


def _critic_kernel(x_ref, w1_ref, b1_ref, w2_ref, b2_ref, w3_ref, b3_ref, o_ref):
    # MXU-input dtype comes from how the weights were prepared (f32 or bf16);
    # accumulation and all elementwise math stay f32.
    cdt = w1_ref.dtype

    # Cast inside the kernel (avoids a separate wrapper-side HBM pass over x).
    x = x_ref[...].astype(cdt)                                       # (TB, S)

    h1 = jnp.dot(x, w1_ref[...], preferred_element_type=jnp.float32)
    h1 = jnp.maximum(h1 + b1_ref[...], 0.0)                          # (TB, 128) f32

    h2 = jnp.dot(h1.astype(cdt), w2_ref[...],
                 preferred_element_type=jnp.float32)
    h2 = jnp.maximum(h2 + b2_ref[...], 0.0)                          # (TB, 256) f32

    # TODO(synk): Dropout(p=0.05) is identity in eval mode; training-mode
    # stochastic masking (pltpu.prng_random_bits) is intentionally omitted.

    # Final (256 -> 1) layer as VPU multiply + fold + one 128-wide lane reduce
    # (keeps the MXU free and halves the XLU reduce width); b3 is an SMEM scalar.
    prod = h2 * w3_ref[...]                                           # (TB, 256) VPU
    n = prod.shape[-1]
    if n > 128 and n % 128 == 0:
        folded = prod[:, :128]
        for k in range(1, n // 128):                                  # n=256 -> one VPU add
            folded = folded + prod[:, k * 128:(k + 1) * 128]
        v = jnp.sum(folded, axis=-1)                                  # (TB,) XLU
    else:
        v = jnp.sum(prod, axis=-1)
    v = v + b3_ref[0]

    # Lane-dense writeback: one (1, TB) row per grid step.
    o_ref[...] = v[None, :].astype(o_ref.dtype)


def _round_up(n, m):
    return pl.cdiv(n, m) * m


def _pick_batch_tile(batch, block_rows):
    """Lane-dense (multiple-of-128) batch tile.

    - Large batches: cap at block_rows (amortizes the ~0.35us per-step cost).
    - Small/medium batches: split into >= 2 tiles when possible so the
      "parallel" grid axis can use both TensorCores on v7x.
    - Tiny batches (< 256 rows): a single 128-row tile.
    """
    cap = max(128, (int(block_rows) // 128) * 128)
    b_ceil = _round_up(batch, 128)
    if b_ceil > cap:
        return cap
    if b_ceil >= 2 * 128:
        return _round_up(pl.cdiv(batch, 2), 128)
    return b_ceil


def prepare_critic_params(params, compute_dtype=jnp.float32):
    """One-time layout / dtype preparation (hoisted out of the per-call hot path).

    compute_dtype is the MXU-input dtype for the two big matmuls (f32 or bf16);
    biases, the final reduce and all accumulation stay f32.
    """
    return {
        "w1": params["w1"].astype(compute_dtype),                 # (S, 128)
        "b1": params["b1"].reshape(1, -1).astype(jnp.float32),    # (1, 128)
        "w2": params["w2"].astype(compute_dtype),                 # (128, 256)
        "b2": params["b2"].reshape(1, -1).astype(jnp.float32),    # (1, 256)
        "w3": params["w3"].reshape(1, -1).astype(jnp.float32),    # (1, 256) row form
        "b3": params["b3"].reshape(-1)[:1].astype(jnp.float32),   # (1,)  scalar -> SMEM
    }


@functools.partial(jax.jit, static_argnames=("block_rows",))
def critic_forward(x, p, *, block_rows=2048):
    """x: (B, state_size); p: output of prepare_critic_params. Returns (B, 1) f32."""
    B, S = x.shape
    w1, b1, w2, b2, w3, b3 = p["w1"], p["b1"], p["w2"], p["b2"], p["w3"], p["b3"]
    H1, H2 = w1.shape[1], w2.shape[1]

    tb = _pick_batch_tile(B, block_rows)
    num_tiles = pl.cdiv(B, tb)            # partial tail block is edge-handled by Pallas

    # Advisory cost estimate so XLA schedules the call sensibly in larger graphs.
    flops = 2 * B * (S * H1 + H1 * H2 + H2)
    bytes_accessed = (
        B * S * x.dtype.itemsize + B * 4
        + w1.size * w1.dtype.itemsize + w2.size * w2.dtype.itemsize
        + (b1.size + b2.size + w3.size + b3.size) * 4
    )

    grid_spec = pltpu.PrefetchScalarGridSpec(
        num_scalar_prefetch=0,
        grid=(num_tiles,),
        in_specs=[
            # x: streamed per batch tile (auto double-buffered pipeline).
            pl.BlockSpec((tb, S), lambda i: (i, 0)),
            # Weights / biases: constant block index -> fetched once, VMEM-resident.
            pl.BlockSpec(w1.shape, lambda i: (0, 0)),
            pl.BlockSpec(b1.shape, lambda i: (0, 0)),
            pl.BlockSpec(w2.shape, lambda i: (0, 0)),
            pl.BlockSpec(b2.shape, lambda i: (0, 0)),
            pl.BlockSpec(w3.shape, lambda i: (0, 0)),
            # b3: single scalar in SMEM (1-D, so no padded (8,128) tile).
            pl.BlockSpec(memory_space=pltpu.MemorySpace.SMEM),
        ],
        # Lane-dense output: one (1, tb) slab of a (1, B) row per grid step.
        out_specs=pl.BlockSpec((1, tb), lambda i: (0, i)),
    )

    out_row = pl.pallas_call(
        _critic_kernel,
        out_shape=jax.ShapeDtypeStruct((1, B), jnp.float32),
        grid_spec=grid_spec,
        compiler_params=pltpu.CompilerParams(
            # Batch axis is embarrassingly parallel -> shards across v7x's 2 TCs.
            dimension_semantics=("parallel",),
            # ~48 MiB leaves headroom under v7x's 64 MiB physical VMEM while
            # covering f32 intermediates for tiles up to a few thousand rows
            # (v5e/v6e have 128 MiB physical, so this is safe everywhere).
            vmem_limit_bytes=48 * 1024 * 1024,
        ),
        cost_estimate=pl.CostEstimate(
            flops=flops, transcendentals=0, bytes_accessed=bytes_accessed),
    )(x, w1, b1, w2, b2, w3, b3)

    return out_row.reshape(B, 1)


def init_critic_params(key, state_size):
    """Deterministic init mimicking nn.Linear default U(-1/sqrt(fan_in), +)."""
    def linear(k, fan_in, fan_out):
        kw, kb = jax.random.split(k)
        bound = 1.0 / math.sqrt(fan_in)
        w = jax.random.uniform(kw, (fan_in, fan_out), jnp.float32, -bound, bound)
        b = jax.random.uniform(kb, (fan_out,), jnp.float32, -bound, bound)
        return w, b

    k1, k2, k3 = jax.random.split(key, 3)
    w1, b1 = linear(k1, state_size, 128)
    w2, b2 = linear(k2, 128, 256)
    w3, b3 = linear(k3, 256, 1)
    return {"w1": w1, "b1": b1, "w2": w2, "b2": b2, "w3": w3, "b3": b3}


def critic_ref(x, p):
    """Pure-JAX reference (eval-mode dropout), f32-accurate matmuls."""
    hp = jax.lax.Precision.HIGHEST
    h1 = jax.nn.relu(jnp.dot(x, p["w1"], precision=hp) + p["b1"])
    h2 = jax.nn.relu(jnp.dot(h1, p["w2"], precision=hp) + p["b2"])
    return jnp.dot(h2, p["w3"], precision=hp) + p["b3"]


if __name__ == "__main__":
    key = jax.random.PRNGKey(0)
    k_param, k_s1, k_s2 = jax.random.split(key, 3)

    state_size = 8          # small synthetic observation dim
    raw_params = init_critic_params(k_param, state_size)
    params_f32 = prepare_critic_params(raw_params, jnp.float32)

    # 1) Tiny demo batch (single 128-row tile, edge-handled tail).
    x_small = jax.random.normal(k_s1, (2, state_size), jnp.float32)
    v_small = jax.block_until_ready(critic_forward(x_small, params_f32))
    ref_small = critic_ref(x_small, raw_params)
    assert v_small.shape == (2, 1), v_small.shape
    assert jnp.allclose(v_small, ref_small, atol=1e-3, rtol=1e-3), (v_small, ref_small)

    # 2) Larger, non-multiple-of-128 batch: exercises a >=2-step grid (both TCs on
    #    v7x) plus the partial tail block, with no wrapper-side pad/copy of x.
    x_big = jax.random.normal(k_s2, (600, state_size), jnp.float32)
    v_big = jax.block_until_ready(critic_forward(x_big, params_f32))
    ref_big = critic_ref(x_big, raw_params)
    assert v_big.shape == (600, 1), v_big.shape
    assert jnp.allclose(v_big, ref_big, atol=1e-3, rtol=1e-3)

    # 3) bf16 MXU-input fast path (weights pre-cast once; x cast inside the
    #    kernel). Accumulation + elementwise stay f32; error vs f32 ref ~1e-2.
    params_bf16 = prepare_critic_params(raw_params, jnp.bfloat16)
    v_bf16 = jax.block_until_ready(critic_forward(x_big, params_bf16))
    assert v_bf16.shape == (600, 1)
    assert float(jnp.max(jnp.abs(v_bf16 - ref_big))) < 5e-2

    print("KERNEL_OK")
</pallas_src>

<mosaic_0001>
module attributes {stable_mosaic.version = 11 : i64} {
  func.func @_critic_kernel(%arg0: i32, %arg1: memref<128x8xf32, #tpu.memory_space<vmem>>, %arg2: memref<8x128xf32, #tpu.memory_space<vmem>>, %arg3: memref<1x128xf32, #tpu.memory_space<vmem>>, %arg4: memref<128x256xf32, #tpu.memory_space<vmem>>, %arg5: memref<1x256xf32, #tpu.memory_space<vmem>>, %arg6: memref<1x256xf32, #tpu.memory_space<vmem>>, %arg7: memref<1xf32, #tpu.memory_space<smem>>, %arg8: memref<1x128xf32, #tpu.memory_space<vmem>>) attributes {dimension_semantics = [#tpu.dimension_semantics<parallel>], iteration_bounds = array<i64: 1>, scalar_prefetch = 0 : i64, scratch_operands = 0 : i64, tpu.core_type = #tpu.core_type<tc>, window_params = [{transform_indices = @transform_0, window_bounds = array<i64: 128, 8>}, {pipeline_mode = #tpu.pipeline_mode<synchronous>, transform_indices = @transform_1, window_bounds = array<i64: 8, 128>}, {pipeline_mode = #tpu.pipeline_mode<synchronous>, transform_indices = @transform_2, window_bounds = array<i64: 1, 128>}, {pipeline_mode = #tpu.pipeline_mode<synchronous>, transform_indices = @transform_3, window_bounds = array<i64: 128, 256>}, {pipeline_mode = #tpu.pipeline_mode<synchronous>, transform_indices = @transform_4, window_bounds = array<i64: 1, 256>}, {pipeline_mode = #tpu.pipeline_mode<synchronous>, transform_indices = @transform_5, window_bounds = array<i64: 1, 256>}, {transform_indices = @transform_6, window_bounds = array<i64: 1>}, {transform_indices = @transform_7, window_bounds = array<i64: 1, 128>}]} {
    %c0 = arith.constant 0 : index
    %c0_0 = arith.constant 0 : index
    %0 = vector.load %arg1[%c0, %c0_0] : memref<128x8xf32, #tpu.memory_space<vmem>>, vector<128x8xf32>
    %c0_1 = arith.constant 0 : index
    %c0_2 = arith.constant 0 : index
    %1 = vector.load %arg2[%c0_1, %c0_2] : memref<8x128xf32, #tpu.memory_space<vmem>>, vector<8x128xf32>
    %cst = arith.constant dense<0.000000e+00> : vector<128x128xf32>
    %2 = tpu.matmul %0, %1, %cst {dimension_numbers = #tpu.dot_dimension_numbers<[1], [0], [0], [1], [0, 0, 1, 1], [], []>} : vector<128x8xf32>, vector<8x128xf32>, vector<128x128xf32> -> vector<128x128xf32>
    %c0_3 = arith.constant 0 : index
    %c0_4 = arith.constant 0 : index
    %3 = vector.load %arg3[%c0_3, %c0_4] : memref<1x128xf32, #tpu.memory_space<vmem>>, vector<1x128xf32>
    %4 = vector.broadcast %3 : vector<1x128xf32> to vector<128x128xf32>
    %5 = arith.addf %2, %4 : vector<128x128xf32>
    %cst_5 = arith.constant 0.000000e+00 : f32
    %6 = vector.broadcast %cst_5 : f32 to vector<128x128xf32>
    %7 = arith.maximumf %5, %6 : vector<128x128xf32>
    %c0_6 = arith.constant 0 : index
    %c0_7 = arith.constant 0 : index
    %8 = vector.load %arg4[%c0_6, %c0_7] : memref<128x256xf32, #tpu.memory_space<vmem>>, vector<128x256xf32>
    %cst_8 = arith.constant dense<0.000000e+00> : vector<128x256xf32>
    %9 = tpu.matmul %7, %8, %cst_8 {dimension_numbers = #tpu.dot_dimension_numbers<[1], [0], [0], [1], [0, 0, 1, 1], [], []>} : vector<128x128xf32>, vector<128x256xf32>, vector<128x256xf32> -> vector<128x256xf32>
    %c0_9 = arith.constant 0 : index
    %c0_10 = arith.constant 0 : index
    %10 = vector.load %arg5[%c0_9, %c0_10] : memref<1x256xf32, #tpu.memory_space<vmem>>, vector<1x256xf32>
    %11 = vector.broadcast %10 : vector<1x256xf32> to vector<128x256xf32>
    %12 = arith.addf %9, %11 : vector<128x256xf32>
    %cst_11 = arith.constant 0.000000e+00 : f32
    %13 = vector.broadcast %cst_11 : f32 to vector<128x256xf32>
    %14 = arith.maximumf %12, %13 : vector<128x256xf32>
    %c0_12 = arith.constant 0 : index
    %c0_13 = arith.constant 0 : index
    %15 = vector.load %arg6[%c0_12, %c0_13] : memref<1x256xf32, #tpu.memory_space<vmem>>, vector<1x256xf32>
    %16 = vector.broadcast %15 : vector<1x256xf32> to vector<128x256xf32>
    %17 = arith.mulf %14, %16 : vector<128x256xf32>
    %18 = vector.extract_strided_slice %17 {offsets = [0, 0], sizes = [128, 128], strides = [1, 1]} : vector<128x256xf32> to vector<128x128xf32>
    %19 = vector.extract_strided_slice %17 {offsets = [0, 128], sizes = [128, 128], strides = [1, 1]} : vector<128x256xf32> to vector<128x128xf32>
    %20 = arith.addf %18, %19 : vector<128x128xf32>
    %cst_14 = arith.constant dense<0.000000e+00> : vector<128xf32>
    %21 = vector.multi_reduction <add>, %20, %cst_14 [1] : vector<128x128xf32> to vector<128xf32>
    %c0_15 = arith.constant 0 : index
    %22 = memref.load %arg7[%c0_15] : memref<1xf32, #tpu.memory_space<smem>>
    %23 = vector.broadcast %22 : f32 to vector<128xf32>
    %24 = arith.addf %21, %23 : vector<128xf32>
    %25 = vector.shape_cast %24 : vector<128xf32> to vector<1x128xf32>
    %c0_16 = arith.constant 0 : index
    %c0_17 = arith.constant 0 : index
    %26 = vector.load %arg8[%c0_16, %c0_17] : memref<1x128xf32, #tpu.memory_space<vmem>>, vector<1x128xf32>
    tpu.vector_store %arg8[%c0_16, %c0_17], %25 {strides = array<i32>} : memref<1x128xf32, #tpu.memory_space<vmem>>, vector<1x128xf32>,
    return
  }
  func.func @transform_0(%arg0: i32) -> (i32, i32) {
    %c0_i32 = arith.constant 0 : i32
    %c0_i32_0 = arith.constant 0 : i32
    return %arg0, %c0_i32 : i32, i32
  }
  func.func @transform_1(%arg0: i32) -> (i32, i32) {
    %c0_i32 = arith.constant 0 : i32
    %c0_i32_0 = arith.constant 0 : i32
    %c0_i32_1 = arith.constant 0 : i32
    return %c0_i32, %c0_i32_0 : i32, i32
  }
  func.func @transform_2(%arg0: i32) -> (i32, i32) {
    %c0_i32 = arith.constant 0 : i32
    %c0_i32_0 = arith.constant 0 : i32
    %c0_i32_1 = arith.constant 0 : i32
    return %c0_i32, %c0_i32_0 : i32, i32
  }
  func.func @transform_3(%arg0: i32) -> (i32, i32) {
    %c0_i32 = arith.constant 0 : i32
    %c0_i32_0 = arith.constant 0 : i32
    %c0_i32_1 = arith.constant 0 : i32
    return %c0_i32, %c0_i32_0 : i32, i32
  }
  func.func @transform_4(%arg0: i32) -> (i32, i32) {
    %c0_i32 = arith.constant 0 : i32
    %c0_i32_0 = arith.constant 0 : i32
    %c0_i32_1 = arith.constant 0 : i32
    return %c0_i32, %c0_i32_0 : i32, i32
  }
  func.func @transform_5(%arg0: i32) -> (i32, i32) {
    %c0_i32 = arith.constant 0 : i32
    %c0_i32_0 = arith.constant 0 : i32
    %c0_i32_1 = arith.constant 0 : i32
    return %c0_i32, %c0_i32_0 : i32, i32
  }
  func.func @transform_6(%arg0: i32) -> i32 {
    %c0_i32 = arith.constant 0 : i32
    %c0_i32_0 = arith.constant 0 : i32
    return %c0_i32 : i32
  }
  func.func @transform_7(%arg0: i32) -> (i32, i32) {
    %c0_i32 = arith.constant 0 : i32
    %c0_i32_0 = arith.constant 0 : i32
    return %c0_i32, %arg0 : i32, i32
  }
}

</mosaic_0001>

<bundles_post_ra>
// kernel: critic_forward.1
= control target key start
LH: loop header
LB: loop body
LE: loop exit
PB: predicated region body
PF: predicated region fallthrough
CT: control target
= control target key end

     0   :  { %13 = vsyncpa [#allocation4], 0  ;;  %s1239_s0 = inlined_call_operand.vmem [shape: f32[2,8], index: 0, kind: input, shape index: {}]   ;;  %s1240_s1 = inlined_call_operand.hbm [shape: f32[8,128], index: 1, kind: input, shape index: {}]   ;;  %s1241_s2 = inlined_call_operand.vmem [shape: f32[1,128], index: 2, kind: input, shape index: {}]   ;;  %s1242_s3 = inlined_call_operand.hbm [shape: f32[128,256], index: 3, kind: input, shape index: {}]   ;;  %s1243_s4 = inlined_call_operand.vmem [shape: f32[1,256], index: 4, kind: input, shape index: {}]   ;;  %s1244_s5 = inlined_call_operand.vmem [shape: f32[1,256], index: 5, kind: input, shape index: {}]   ;;  %s1245_s6 = inlined_call_operand.<no memory space> [shape: f32[1], index: 6, kind: input, shape index: {}]   ;;  %s1246_s7 = inlined_call_operand.hbm [shape: f32[1,2], index: 7, kind: output, shape index: {}]  }
   0x1   :  { %14 = vsyncpa [#allocation7], 0 }
   0x2   :  { %15 = vsyncpa [#allocation5], 0  ;;  %s944_s24 = smov [#allocation3]   ;;  %s945_s26 = smov [#allocation6]  }
   0x3   :  { %s24_s25 = sshll.u32 %s944_s24, 4  ;;  %s35_s27 = sshll.u32 %s945_s26, 4  ;;  %s25_s25 = int_to_ptr.vmem [resolvable:$true] %s24_s25  ;;  %s36_s27 = int_to_ptr.vmem [resolvable:$true] %s35_s27 }
   0x4   :  { %s886_s28 = scalar_lea.vmem %s25_s25, 128  ;;  %p891_p1 = scmp.lt.s32.totalorder %s25_s25, %s25_s25 }
   0x5   :  { %p887_p0 = scmp.ne.s32.totalorder %s25_s25, %s886_s28  ;;  %p892_p2 = scmp.lt.s32.totalorder %s886_s28, %s886_s28 }
   0x7   :  { %p893_p3 = por %p892_p2, %p891_p1 }
   0x9   :  { %p894_p4 = pnand %p893_p3, %p887_p0 }
   0xb   :  { %897 = shalt.err (!%p894_p4)
}
   0xc   :  { %27 = dma.hbm_to_vmem [thread:$0]  %s1240_s1, 128, %s25_s25, [#allocation4]  }
   0xd   :  { %s906_s8 = scalar_lea.vmem %s36_s27, 4096  ;;  %p911_p6 = scmp.lt.s32.totalorder %s36_s27, %s36_s27 }
   0xe   :  { %p907_p5 = scmp.ne.s32.totalorder %s36_s27, %s906_s8  ;;  %p912_p7 = scmp.lt.s32.totalorder %s906_s8, %s906_s8 }
  0x10   :  { %p913_p8 = por %p912_p7, %p911_p6 }
  0x12   :  { %p914_p9 = pnand %p913_p8, %p907_p5 }
  0x14   :  { %917 = shalt.err (!%p914_p9)
}
  0x15   :  { %s946_s9 = smov 256   ;;  %s947_s10 = smov 16  }
  0x16   :  { %41 = dma.hbm_to_vmem [thread:$0]  %s1242_s3, 4096, %s36_s27, [#allocation7], %s946_s9, %s946_s9, %s947_s10  }
  0x17   :  { %938 = dma.done.wait [#allocation4], 128  }
  0x18   :  { %939 = vsyncadd [#allocation4], 4294967168 }
  0x19   :  { %940 = dma.done.wait [#allocation7], 4096  }
  0x1a   :  { %941 = vsyncadd [#allocation7], 4294963200  ;;  %vm78_vm0 = vcmask 64512   ;;  %v70_v0 = vld [vmem:[#allocation3] sm:$0xff]  ;;  %v55_v2 = vld [vmem:[%s1239_s0 + $0x8] sm:$0xff]  ;;  %v948_v49 = vmov 0.0  }
  0x1b   :  { %v54_v1 = vld [vmem:[%s1239_s0] sm:$0xff]  ;;  %814 = vmatprep.subr.mxu0 %v70_v0  ;;  %v56_v3 = vld [vmem:[%s1239_s0 + $0x10] sm:$0xff]  ;;  %v57_v4 = vld [vmem:[%s1239_s0 + $0x18] sm:$0xff]  ;;  %438 = vmatprep.mubr.f32.mxu1 %v948_v49  ;;  %vm662_vm1 = vcmask 130112   ;;  %vm669_vm2 = vcmask 195712   ;;  %vm676_vm3 = vcmask 261312  }
  0x1c   :  { %816 = vmatprep.mubr.msk.f32.mxu0 %vm78_vm0, %v54_v1  ;;  %815 = vmatpush3.msra.mxu0 %v70_v0  ;;  %v58_v5 = vld [vmem:[%s1239_s0 + $0x20] sm:$0xff]  ;;  %v318_v7 = vld [vmem:[#allocation6 + $0xf0] sm:$0xff]  ;;  %v317_v8 = vld [vmem:[#allocation6 + $0xe8] sm:$0xff]  ;;  %vm683_vm4 = vcmask 326912   ;;  %vm690_vm5 = vcmask 392512   ;;  %vm697_vm6 = vcmask 458112  }
  0x1d   :  { %817 = vmatmul.mubr.msk.f32.vlgmr.msra.gmra.mxu0 %vm78_vm0, %v55_v2  ;;  %v319_v6 = vld [vmem:[#allocation6 + $0xf8] sm:$0xff]  ;;  %v316_v9 = vld [vmem:[#allocation6 + $0xe0] sm:$0xff]  ;;  %v60_v12 = vld [vmem:[%s1239_s0 + $0x30] sm:$0xff]  ;;  %vm704_vm7 = vcmask 523712   ;;  %vm711_vm8 = vcmask 589312   ;;  %vm718_vm9 = vcmask 654912  }
  0x1e   :  { %819 = vmatprep.mubr.msk.f32.mxu0 %vm78_vm0, %v56_v3  ;;  %332 = vmatprep.subr.mxu0 %v319_v6  ;;  %v59_v10 = vld [vmem:[%s1239_s0 + $0x28] sm:$0xff]  ;;  %v315_v11 = vld [vmem:[#allocation6 + $0xd8] sm:$0xff]  ;;  %v314_v13 = vld [vmem:[#allocation6 + $0xd0] sm:$0xff]  ;;  %vm725_vm10 = vcmask 720512   ;;  %vm732_vm11 = vcmask 786112   ;;  %vm739_vm12 = vcmask 851712  }
  0x1f   :  { %840 = vmatprep.subr.mxu1 %v319_v6  ;;  %333 = vmatpush1.msra.mxu0 %v318_v7  ;;  %v313_v14 = vld [vmem:[#allocation6 + $0xc8] sm:$0xff]  ;;  %v312_v15 = vld [vmem:[#allocation6 + $0xc0] sm:$0xff]  ;;  %v61_v16 = vld [vmem:[%s1239_s0 + $0x38] sm:$0xff]  ;;  %vm746_vm13 = vcmask 917312   ;;  %vm753_vm14 = vcmask 982912   ;;  %vm760_vm15 = vcmask 1048512  }
  0x20   :  { %856 = vmatpush1.msra.mxu1 %v318_v7  ;;  %334 = vmatprep.subr.mxu0 %v317_v8  ;;  %v311_v17 = vld [vmem:[#allocation6 + $0xb8] sm:$0xff]  ;;  %v310_v19 = vld [vmem:[#allocation6 + $0xb0] sm:$0xff]  ;;  %v309_v20 = vld [vmem:[#allocation6 + $0xa8] sm:$0xff] }
  0x21   :  { %820 = vmatmul.mubr.msk.f32.gmra.mxu0 %vm78_vm0, %v57_v4  ;;  %841 = vmatprep.subr.mxu1 %v317_v8  ;;  %v62_v18 = vld [vmem:[%s1239_s0 + $0x40] sm:$0xff]  ;;  %v308_v21 = vld [vmem:[#allocation6 + $0xa0] sm:$0xff]  ;;  %v64_v24 = vld [vmem:[%s1239_s0 + $0x50] sm:$0xff] }
  0x22   :  { %822 = vmatprep.mubr.msk.f32.mxu0 %vm78_vm0, %v58_v5  ;;  %335 = vmatpush1.msra.mxu0 %v316_v9  ;;  %v63_v22 = vld [vmem:[%s1239_s0 + $0x48] sm:$0xff]  ;;  %v307_v23 = vld [vmem:[#allocation6 + $0x98] sm:$0xff]  ;;  %v306_v25 = vld [vmem:[#allocation6 + $0x90] sm:$0xff] }
  0x23   :  { %857 = vmatpush1.msra.mxu1 %v316_v9  ;;  %336 = vmatprep.subr.mxu0 %v315_v11  ;;  %v305_v26 = vld [vmem:[#allocation6 + $0x88] sm:$0xff]  ;;  %v304_v27 = vld [vmem:[#allocation6 + $0x80] sm:$0xff]  ;;  %v65_v28 = vld [vmem:[%s1239_s0 + $0x58] sm:$0xff] }
  0x24   :  { %337 = vmatpush1.msra.mxu0 %v314_v13  ;;  %842 = vmatprep.subr.mxu1 %v315_v11  ;;  %v303_v29 = vld [vmem:[#allocation6 + $0x78] sm:$0xff]  ;;  %v302_v31 = vld [vmem:[#allocation6 + $0x70] sm:$0xff]  ;;  %v301_v32 = vld [vmem:[#allocation6 + $0x68] sm:$0xff] }
  0x25   :  { %823 = vmatmul.mubr.msk.f32.gmra.mxu0 %vm78_vm0, %v59_v10  ;;  %338 = vmatprep.subr.mxu0 %v313_v14  ;;  %v66_v30 = vld [vmem:[%s1239_s0 + $0x60] sm:$0xff]  ;;  %v300_v33 = vld [vmem:[#allocation6 + $0x60] sm:$0xff]  ;;  %v68_v36 = vld [vmem:[%s1239_s0 + $0x70] sm:$0xff] }
  0x26   :  { %825 = vmatprep.mubr.msk.f32.mxu0 %vm78_vm0, %v60_v12  ;;  %339 = vmatpush1.msra.mxu0 %v312_v15  ;;  %v67_v34 = vld [vmem:[%s1239_s0 + $0x68] sm:$0xff]  ;;  %v299_v35 = vld [vmem:[#allocation6 + $0x58] sm:$0xff]  ;;  %v298_v37 = vld [vmem:[#allocation6 + $0x50] sm:$0xff] }
  0x27   :  { %858 = vmatpush1.msra.mxu1 %v314_v13  ;;  %340 = vmatprep.subr.mxu0 %v311_v17  ;;  %v297_v38 = vld [vmem:[#allocation6 + $0x48] sm:$0xff]  ;;  %v296_v39 = vld [vmem:[#allocation6 + $0x40] sm:$0xff]  ;;  %v69_v40 = vld [vmem:[%s1239_s0 + $0x78] sm:$0xff] }
  0x28   :  { %341 = vmatpush1.msra.mxu0 %v310_v19  ;;  %843 = vmatprep.subr.mxu1 %v313_v14  ;;  %v295_v41 = vld [vmem:[#allocation6 + $0x38] sm:$0xff]  ;;  %v294_v42 = vld [vmem:[#allocation6 + $0x30] sm:$0xff]  ;;  %v293_v43 = vld [vmem:[#allocation6 + $0x28] sm:$0xff] }
  0x29   :  { %826 = vmatmul.mubr.msk.f32.gmra.mxu0 %vm78_vm0, %v61_v16  ;;  %342 = vmatprep.subr.mxu0 %v309_v20  ;;  %v292_v44 = vld [vmem:[#allocation6 + $0x20] sm:$0xff]  ;;  %v291_v45 = vld [vmem:[#allocation6 + $0x18] sm:$0xff]  ;;  %v290_v46 = vld [vmem:[#allocation6 + $0x10] sm:$0xff] }
  0x2a   :  { %828 = vmatprep.mubr.msk.f32.mxu0 %vm78_vm0, %v62_v18  ;;  %343 = vmatpush1.msra.mxu0 %v308_v21  ;;  %v289_v47 = vld [vmem:[#allocation6 + $0x8] sm:$0xff]  ;;  %v288_v48 = vld [vmem:[#allocation6] sm:$0xff]  ;;  %v1065_v51 = vld [vmem:[%s1241_s2] ss:$0 sm:$0xff] }
  0x2b   :  { %859 = vmatpush1.msra.mxu1 %v312_v15  ;;  %344 = vmatprep.subr.mxu0 %v307_v23 }
  0x2c   :  { %345 = vmatpush1.msra.mxu0 %v306_v25  ;;  %844 = vmatprep.subr.mxu1 %v311_v17 }
  0x2d   :  { %829 = vmatmul.mubr.msk.f32.gmra.mxu0 %vm78_vm0, %v63_v22  ;;  %346 = vmatprep.subr.mxu0 %v305_v26 }
  0x2e   :  { %831 = vmatprep.mubr.msk.f32.mxu0 %vm78_vm0, %v64_v24  ;;  %347 = vmatpush1.msra.mxu0 %v304_v27 }
  0x2f   :  { %860 = vmatpush1.msra.mxu1 %v310_v19  ;;  %348 = vmatprep.subr.mxu0 %v303_v29 }
  0x30   :  { %349 = vmatpush1.msra.mxu0 %v302_v31  ;;  %845 = vmatprep.subr.mxu1 %v309_v20 }
  0x31   :  { %832 = vmatmul.mubr.msk.f32.gmra.mxu0 %vm78_vm0, %v65_v28  ;;  %350 = vmatprep.subr.mxu0 %v301_v32 }
  0x32   :  { %834 = vmatprep.mubr.msk.f32.mxu0 %vm78_vm0, %v66_v30  ;;  %351 = vmatpush1.msra.mxu0 %v300_v33 }
  0x33   :  { %861 = vmatpush1.msra.mxu1 %v308_v21  ;;  %352 = vmatprep.subr.mxu0 %v299_v35 }
  0x34   :  { %353 = vmatpush1.msra.mxu0 %v298_v37  ;;  %846 = vmatprep.subr.mxu1 %v307_v23 }
  0x35   :  { %835 = vmatmul.mubr.msk.f32.gmra.mxu0 %vm78_vm0, %v67_v34  ;;  %354 = vmatprep.subr.mxu0 %v297_v38 }
  0x36   :  { %837 = vmatprep.mubr.msk.f32.mxu0 %vm78_vm0, %v68_v36  ;;  %862 = vmatpush1.msra.mxu1 %v306_v25 }
  0x37   :  { %355 = vmatpush1.msra.mxu0 %v296_v39  ;;  %847 = vmatprep.subr.mxu1 %v305_v26 }
  0x38   :  { %356 = vmatprep.subr.mxu0 %v295_v41  ;;  %863 = vmatpush1.msra.mxu1 %v304_v27 }
  0x39   :  { %838 = vmatmul.mubr.msk.f32.gmra.mxu0 %vm78_vm0, %v69_v40  ;;  %848 = vmatprep.subr.mxu1 %v303_v29 }
  0x3a   :  { %864 = vmatpush1.msra.mxu1 %v302_v31  ;;  %357 = vmatpush1.msra.mxu0 %v294_v42 }
  0x3b   :  { %849 = vmatprep.subr.mxu1 %v301_v32  ;;  %358 = vmatprep.subr.mxu0 %v293_v43 }
  0x3c   :  { %865 = vmatpush1.msra.mxu1 %v300_v33  ;;  %359 = vmatpush1.msra.mxu0 %v292_v44 }
  0x3d   :  { %850 = vmatprep.subr.mxu1 %v299_v35  ;;  %360 = vmatprep.subr.mxu0 %v291_v45  ;;  %v322_v35 = vlaneseq }
  0x3e   :  { %866 = vmatpush1.msra.mxu1 %v298_v37  ;;  %361 = vmatpush1.msra.mxu0 %v290_v46 }
  0x3f   :  { %851 = vmatprep.subr.mxu1 %v297_v38  ;;  %362 = vmatprep.subr.mxu0 %v289_v47  ;;  %v1098_v36 = vshrl.u32 %v322_v35, 7  ;;  %v320_v38 = vld [vmem:[%s1243_s4] sm:$0x3] }
  0x40   :  { %867 = vmatpush1.msra.mxu1 %v296_v39  ;;  %363 = vmatpush1.msra.mxu0 %v288_v48 }
  0x41   :  { %852 = vmatprep.subr.mxu1 %v295_v41  ;;  %396 = vmatprep.mubr.f32.mxu0 %v948_v49  ;;  %v324_v37 = vsub.s32 0, %v1098_v36  ;;  %v328_v39 = vsub.s32 1, %v1098_v36 }
  0x42   :  { %868 = vmatpush1.msra.mxu1 %v294_v42 }
  0x43   :  { %853 = vmatprep.subr.mxu1 %v293_v43  ;;  %v1105_v40 = vrot.slane %v320_v38, %v324_v37  ;;  %v1107_v41 = vrot.slane %v320_v38, %v328_v39  ;;  %v525_v43 = vld [vmem:[%s1244_s5] sm:$0x3] }
  0x44   :  { %869 = vmatpush1.msra.mxu1 %v292_v44 }
  0x45   :  { %854 = vmatprep.subr.mxu1 %v291_v45 }
  0x46   :  { %870 = vmatpush1.msra.mxu1 %v290_v46 }
  0x47   :  { %855 = vmatprep.subr.mxu1 %v289_v47 }
  0x48   :  { %871 = vmatpush1.msra.mxu1 %v288_v48  ;;  %v1114_v48 = vrot.slane %v525_v43, %v324_v37 }
  0xdd   :  { %v818_v50 = vpop.f32.mrf.mxu0 }
  0xde   :  { %v199_v55 = vadd.f32 %v818_v50, %v1065_v51 }
  0xdf   :  { %v193_v52 = vpop.f32.mrf.mxu0 }
  0xe0   :  { %v194_v53 = vadd.f32 %v1065_v51, %v193_v52  ;;  %v273_v59 = vmax.f32 %v199_v55, 0.0 }
  0xe1   :  { %v821_v54 = vpop.f32.mrf.mxu0 }
  0xe2   :  { %v272_v56 = vmax.f32 %v194_v53, 0.0  ;;  %v209_v63 = vadd.f32 %v821_v54, %v1065_v51 }
  0xe3   :  { %v203_v57 = vpop.f32.mrf.mxu0 }
  0xe4   :  { %397 = vmatmul.mubr.f32.vlgmr.msra.gmra.mxu0 %v272_v56  ;;  %v204_v60 = vadd.f32 %v1065_v51, %v203_v57  ;;  %v275_v5 = vmax.f32 %v209_v63, 0.0 }
  0xe5   :  { %v824_v58 = vpop.f32.mrf.mxu0  ;;  %402 = vmatprep.mubr.f32.mxu0 %v948_v49 }
  0xe6   :  { %v274_v0 = vmax.f32 %v204_v60, 0.0  ;;  %v219_v10 = vadd.f32 %v824_v58, %v1065_v51 }
  0xe7   :  { %v213_v61 = vpop.f32.mrf.mxu0 }
  0xe8   :  { %403 = vmatmul.mubr.f32.gmra.mxu0 %v273_v59  ;;  %v214_v6 = vadd.f32 %v1065_v51, %v213_v61  ;;  %v277_v15 = vmax.f32 %v219_v10, 0.0 }
  0xe9   :  { %v827_v62 = vpop.f32.mrf.mxu0  ;;  %408 = vmatprep.mubr.f32.mxu0 %v948_v49 }
  0xea   :  { %v229_v1 = vadd.f32 %v827_v62, %v1065_v51  ;;  %v276_v11 = vmax.f32 %v214_v6, 0.0 }
  0xeb   :  { %v223_v2 = vpop.f32.mrf.mxu0 }
  0xec   :  { %v279_v3 = vmax.f32 %v229_v1, 0.0  ;;  %409 = vmatmul.mubr.f32.gmra.mxu0 %v274_v0  ;;  %v224_v16 = vadd.f32 %v1065_v51, %v223_v2 }
  0xed   :  { %v830_v4 = vpop.f32.mrf.mxu0  ;;  %414 = vmatprep.mubr.f32.mxu0 %v948_v49 }
  0xee   :  { %439 = vmatmul.mubr.f32.vlgmr.msra.gmra.mxu1 %v279_v3  ;;  %v239_v12 = vadd.f32 %v830_v4, %v1065_v51  ;;  %v278_v20 = vmax.f32 %v224_v16, 0.0 }
  0xef   :  { %v233_v7 = vpop.f32.mrf.mxu0  ;;  %444 = vmatprep.mubr.f32.mxu1 %v948_v49 }
  0xf0   :  { %v234_v8 = vadd.f32 %v1065_v51, %v233_v7  ;;  %415 = vmatmul.mubr.f32.gmra.mxu0 %v275_v5  ;;  %v281_v17 = vmax.f32 %v239_v12, 0.0 }
  0xf1   :  { %v833_v9 = vpop.f32.mrf.mxu0  ;;  %420 = vmatprep.mubr.f32.mxu0 %v948_v49 }
  0xf2   :  { %v280_v13 = vmax.f32 %v234_v8, 0.0  ;;  %v249_v21 = vadd.f32 %v833_v9, %v1065_v51 }
  0xf3   :  { %v243_v14 = vpop.f32.mrf.mxu0 }
  0xf4   :  { %421 = vmatmul.mubr.f32.gmra.mxu0 %v276_v11  ;;  %445 = vmatmul.mubr.f32.gmra.mxu1 %v280_v13  ;;  %v244_v18 = vadd.f32 %v1065_v51, %v243_v14  ;;  %v283_v24 = vmax.f32 %v249_v21, 0.0 }
  0xf5   :  { %426 = vmatprep.mubr.f32.mxu0 %v948_v49  ;;  %450 = vmatprep.mubr.f32.mxu1 %v948_v49  ;;  %v836_v19 = vpop.f32.mrf.mxu0 }
  0xf6   :  { %v282_v22 = vmax.f32 %v244_v18, 0.0  ;;  %v259_v27 = vadd.f32 %v836_v19, %v1065_v51 }
  0xf7   :  { %v253_v23 = vpop.f32.mrf.mxu0 }
  0xf8   :  { %427 = vmatmul.mubr.f32.gmra.mxu0 %v277_v15  ;;  %451 = vmatmul.mubr.f32.gmra.mxu1 %v281_v17  ;;  %v254_v25 = vadd.f32 %v1065_v51, %v253_v23  ;;  %v285_v30 = vmax.f32 %v259_v27, 0.0 }
  0xf9   :  { %432 = vmatprep.mubr.f32.mxu0 %v948_v49  ;;  %456 = vmatprep.mubr.f32.mxu1 %v948_v49  ;;  %v839_v26 = vpop.f32.mrf.mxu0 }
  0xfa   :  { %v284_v28 = vmax.f32 %v254_v25, 0.0  ;;  %v269_v32 = vadd.f32 %v839_v26, %v1065_v51 }
  0xfb   :  { %v263_v29 = vpop.f32.mrf.mxu0 }
  0xfc   :  { %433 = vmatmul.mubr.f32.gmra.mxu0 %v278_v20  ;;  %457 = vmatmul.mubr.f32.gmra.mxu1 %v282_v22  ;;  %v264_v31 = vadd.f32 %v1065_v51, %v263_v29  ;;  %v287_v34 = vmax.f32 %v269_v32, 0.0 }
  0xfd   :  { %462 = vmatprep.mubr.f32.mxu1 %v948_v49 }
  0xfe   :  { %v286_v33 = vmax.f32 %v264_v31, 0.0 }
 0x100   :  { %463 = vmatmul.mubr.f32.gmra.mxu1 %v283_v24 }
 0x101   :  { %468 = vmatprep.mubr.f32.mxu1 %v948_v49 }
 0x104   :  { %469 = vmatmul.mubr.f32.gmra.mxu1 %v284_v28 }
 0x105   :  { %474 = vmatprep.mubr.f32.mxu1 %v948_v49 }
 0x108   :  { %475 = vmatmul.mubr.f32.gmra.mxu1 %v285_v30 }
 0x109   :  { %480 = vmatprep.mubr.f32.mxu1 %v948_v49 }
 0x10c   :  { %481 = vmatmul.mubr.f32.gmra.mxu1 %v286_v33 }
 0x10d   :  { %486 = vmatprep.mubr.f32.mxu1 %v948_v49  ;;  %v1116_v49 = vrot.slane %v525_v43, %v328_v39 }
 0x110   :  { %487 = vmatmul.mubr.f32.gmra.mxu1 %v287_v34 }
 0x1a4   :  { %v398_v42 = vpop.f32.mrf.mxu0 }
 0x1a5   :  { %v399_v44 = vadd.f32 %v398_v42, %v1105_v40 }
 0x1a6   :  { %v400_v45 = vpop.f32.mrf.mxu0 }
 0x1a7   :  { %v493_v46 = vmax.f32 %v399_v44, 0.0  ;;  %v401_v47 = vadd.f32 %v400_v45, %v1107_v41 }
 0x1a8   :  { %v404_v50 = vpop.f32.mrf.mxu0 }
 0x1a9   :  { %v494_v51 = vmax.f32 %v401_v47, 0.0  ;;  %v405_v52 = vadd.f32 %v404_v50, %v1105_v40  ;;  %v537_v55 = vmul.f32 %v1114_v48, %v493_v46 }
 0x1aa   :  { %v406_v53 = vpop.f32.mrf.mxu0 }
 0x1ab   :  { %v407_v54 = vadd.f32 %v406_v53, %v1107_v41  ;;  %v538_v56 = vmul.f32 %v1116_v49, %v494_v51  ;;  %v495_v57 = vmax.f32 %v405_v52, 0.0 }
 0x1ac   :  { %v410_v58 = vpop.f32.mrf.mxu0 }
 0x1ad   :  { %v496_v59 = vmax.f32 %v407_v54, 0.0  ;;  %v411_v60 = vadd.f32 %v410_v58, %v1105_v40  ;;  %v569_v61 = vadd.f32 %v538_v56, %v537_v55  ;;  %v539_v2 = vmul.f32 %v1114_v48, %v495_v57 }
 0x1ae   :  { %v412_v62 = vpop.f32.mrf.mxu0  ;;  %v440_v63 = vpop.f32.mrf.mxu1 }
 0x1af   :  { %v540_v0 = vmul.f32 %v1116_v49, %v496_v59  ;;  %v413_v1 = vadd.f32 %v412_v62, %v1107_v41  ;;  %585 = vadd.xlane.f32.xlu0 %v569_v61  ;;  %v497_v3 = vmax.f32 %v411_v60, 0.0  ;;  %v441_v4 = vadd.f32 %v440_v63, %v1105_v40 }
 0x1b0   :  { %v416_v5 = vpop.f32.mrf.mxu0  ;;  %v442_v6 = vpop.f32.mrf.mxu1 }
 0x1b1   :  { %v498_v7 = vmax.f32 %v413_v1, 0.0  ;;  %v443_v8 = vadd.f32 %v442_v6, %v1107_v41  ;;  %v570_v10 = vadd.f32 %v540_v0, %v539_v2  ;;  %v417_v11 = vadd.f32 %v416_v5, %v1105_v40 }
 0x1b2   :  { %v418_v9 = vpop.f32.mrf.mxu0  ;;  %v507_v14 = vmax.f32 %v441_v4, 0.0  ;;  %v541_v17 = vmul.f32 %v1114_v48, %v497_v3 }
 0x1b3   :  { %v508_v12 = vmax.f32 %v443_v8, 0.0  ;;  %v419_v13 = vadd.f32 %v418_v9, %v1107_v41  ;;  %587 = vadd.xlane.f32.xlu0 %v570_v10  ;;  %v542_v18 = vmul.f32 %v1116_v49, %v498_v7  ;;  %v499_v25 = vmax.f32 %v417_v11, 0.0 }
 0x1b4   :  { %v422_v15 = vpop.f32.mrf.mxu0  ;;  %v446_v16 = vpop.f32.mrf.mxu1  ;;  %v551_v29 = vmul.f32 %v1114_v48, %v507_v14 }
 0x1b5   :  { %v423_v19 = vadd.f32 %v422_v15, %v1105_v40  ;;  %v552_v20 = vmul.f32 %v1116_v49, %v508_v12  ;;  %v500_v21 = vmax.f32 %v419_v13, 0.0  ;;  %v571_v24 = vadd.f32 %v542_v18, %v541_v17 }
 0x1b6   :  { %v424_v22 = vpop.f32.mrf.mxu0  ;;  %v448_v23 = vpop.f32.mrf.mxu1  ;;  %v447_v26 = vadd.f32 %v446_v16, %v1105_v40  ;;  %v543_v44 = vmul.f32 %v1114_v48, %v499_v25 }
 0x1b7   :  { %v425_v27 = vadd.f32 %v424_v22, %v1107_v41  ;;  %v449_v28 = vadd.f32 %v448_v23, %v1107_v41  ;;  %v501_v30 = vmax.f32 %v423_v19, 0.0  ;;  %589 = vadd.xlane.f32.xlu1 %v571_v24  ;;  %v544_v37 = vmul.f32 %v1116_v49, %v500_v21 }
 0x1b8   :  { %v428_v31 = vpop.f32.mrf.mxu0  ;;  %v452_v32 = vpop.f32.mrf.mxu1  ;;  %v576_v43 = vadd.f32 %v552_v20, %v551_v29  ;;  %v509_v45 = vmax.f32 %v447_v26, 0.0 }
 0x1b9   :  { %v502_v33 = vmax.f32 %v425_v27, 0.0  ;;  %v429_v34 = vadd.f32 %v428_v31, %v1105_v40  ;;  %v510_v38 = vmax.f32 %v449_v28, 0.0  ;;  %v545_v50 = vmul.f32 %v1114_v48, %v501_v30 }
 0x1ba   :  { %v430_v39 = vpop.f32.mrf.mxu0  ;;  %v454_v42 = vpop.f32.mrf.mxu1  ;;  %v453_v52 = vadd.f32 %v452_v32, %v1105_v40  ;;  %v572_v62 = vadd.f32 %v544_v37, %v543_v44  ;;  %v553_v0 = vmul.f32 %v1114_v48, %v509_v45 }
 0x1bb   :  { %v546_v46 = vmul.f32 %v1116_v49, %v502_v33  ;;  %v431_v47 = vadd.f32 %v430_v39, %v1107_v41  ;;  %v503_v51 = vmax.f32 %v429_v34, 0.0  ;;  %v455_v53 = vadd.f32 %v454_v42, %v1107_v41  ;;  %599 = vadd.xlane.f32.xlu1 %v576_v43 }
 0x1bc   :  { %v434_v54 = vpop.f32.mrf.mxu0  ;;  %v458_v55 = vpop.f32.mrf.mxu1  ;;  %v554_v58 = vmul.f32 %v1116_v49, %v510_v38  ;;  %v511_v5 = vmax.f32 %v453_v52, 0.0 }
 0x1bd   :  { %v504_v56 = vmax.f32 %v431_v47, 0.0  ;;  %v435_v57 = vadd.f32 %v434_v54, %v1105_v40  ;;  %v512_v59 = vmax.f32 %v455_v53, 0.0  ;;  %v573_v63 = vadd.f32 %v546_v46, %v545_v50 }
 0x1be   :  { %v436_v60 = vpop.f32.mrf.mxu0  ;;  %v460_v61 = vpop.f32.mrf.mxu1  ;;  %v547_v4 = vmul.f32 %v1114_v48, %v503_v51  ;;  %v459_v6 = vadd.f32 %v458_v55, %v1105_v40  ;;  %v577_v15 = vadd.f32 %v554_v58, %v553_v0  ;;  %v555_v20 = vmul.f32 %v1114_v48, %v511_v5 }
 0x1bf   :  { %v548_v1 = vmul.f32 %v1116_v49, %v504_v56  ;;  %v505_v2 = vmax.f32 %v435_v57, 0.0  ;;  %v437_v3 = vadd.f32 %v436_v60, %v1107_v41  ;;  %v461_v7 = vadd.f32 %v460_v61, %v1107_v41  ;;  %591 = vadd.xlane.f32.xlu1 %v572_v62  ;;  %593 = vadd.xlane.f32.xlu0 %v573_v63 }
 0x1c0   :  { %v464_v8 = vpop.f32.mrf.mxu1  ;;  %v556_v11 = vmul.f32 %v1116_v49, %v512_v59  ;;  %v513_v21 = vmax.f32 %v459_v6, 0.0 }
 0x1c1   :  { %v506_v9 = vmax.f32 %v437_v3, 0.0  ;;  %v465_v10 = vadd.f32 %v464_v8, %v1105_v40  ;;  %v514_v12 = vmax.f32 %v461_v7, 0.0  ;;  %v574_v14 = vadd.f32 %v548_v1, %v547_v4 }
 0x1c2   :  { %v466_v13 = vpop.f32.mrf.mxu1  ;;  %v549_v16 = vmul.f32 %v1114_v48, %v505_v2  ;;  %v578_v28 = vadd.f32 %v556_v11, %v555_v20  ;;  %v557_v33 = vmul.f32 %v1114_v48, %v513_v21 }
 0x1c3   :  { %v550_v17 = vmul.f32 %v1116_v49, %v506_v9  ;;  %v515_v18 = vmax.f32 %v465_v10, 0.0  ;;  %v467_v19 = vadd.f32 %v466_v13, %v1107_v41  ;;  %595 = vadd.xlane.f32.xlu1 %v574_v14  ;;  %601 = vadd.xlane.f32.xlu0 %v577_v15  ;;  %v558_v26 = vmul.f32 %v1116_v49, %v514_v12 }
 0x1c4   :  { %v470_v22 = vpop.f32.mrf.mxu1  ;;  %v1181_v9 = vand.u32 127, %v322_v35 }
 0x1c5   :  { %v516_v23 = vmax.f32 %v467_v19, 0.0  ;;  %v471_v24 = vadd.f32 %v470_v22, %v1105_v40  ;;  %v575_v25 = vadd.f32 %v550_v17, %v549_v16  ;;  %v559_v29 = vmul.f32 %v1114_v48, %v515_v18 }
 0x1c6   :  { %v472_v27 = vpop.f32.mrf.mxu1  ;;  %v579_v43 = vadd.f32 %v558_v26, %v557_v33  ;;  %v657_v11 = vadd.s32 4294967288, %v1181_v9  ;;  %v671_v14 = vadd.s32 4294967272, %v1181_v9  ;;  %v678_v17 = vadd.s32 4294967264, %v1181_v9 }
 0x1c7   :  { %v560_v30 = vmul.f32 %v1116_v49, %v516_v23  ;;  %v517_v31 = vmax.f32 %v471_v24, 0.0  ;;  %v473_v32 = vadd.f32 %v472_v27, %v1107_v41  ;;  %603 = vadd.xlane.f32.xlu1 %v578_v28  ;;  %597 = vadd.xlane.f32.xlu0 %v575_v25  ;;  %v655_v18 = vsub.s32 %v1181_v9, %v1098_v36 }
 0x1c8   :  { %v476_v34 = vpop.f32.mrf.mxu1  ;;  %v674_v20 = vsub.s32 %v671_v14, %v1098_v36  ;;  %v685_v23 = vadd.s32 4294967256, %v1181_v9  ;;  %v681_v27 = vsub.s32 %v678_v17, %v1098_v36 }
 0x1c9   :  { %v518_v37 = vmax.f32 %v473_v32, 0.0  ;;  %v477_v38 = vadd.f32 %v476_v34, %v1105_v40  ;;  %v580_v39 = vadd.f32 %v560_v30, %v559_v29  ;;  %v561_v44 = vmul.f32 %v1114_v48, %v517_v31 }
 0x1ca   :  { %v478_v42 = vpop.f32.mrf.mxu1  ;;  %v692_v29 = vadd.s32 4294967248, %v1181_v9  ;;  %v688_v32 = vsub.s32 %v685_v23, %v1098_v36 }
 0x1cb   :  { %v562_v45 = vmul.f32 %v1116_v49, %v518_v37  ;;  %v519_v46 = vmax.f32 %v477_v38, 0.0  ;;  %v479_v47 = vadd.f32 %v478_v42, %v1107_v41  ;;  %607 = vadd.xlane.f32.xlu1 %v580_v39  ;;  %605 = vadd.xlane.f32.xlu0 %v579_v43  ;;  %v699_v39 = vadd.s32 4294967240, %v1181_v9 }
 0x1cc   :  { %v482_v50 = vpop.f32.mrf.mxu1 }
 0x1cd   :  { %v520_v51 = vmax.f32 %v479_v47, 0.0  ;;  %v483_v52 = vadd.f32 %v482_v50, %v1105_v40  ;;  %v581_v53 = vadd.f32 %v562_v45, %v561_v44  ;;  %v563_v55 = vmul.f32 %v1114_v48, %v519_v46 }
 0x1ce   :  { %v484_v54 = vpop.f32.mrf.mxu1  ;;  %v695_v44 = vsub.s32 %v692_v29, %v1098_v36  ;;  %v706_v47 = vadd.s32 4294967232, %v1181_v9 }
 0x1cf   :  { %v564_v56 = vmul.f32 %v1116_v49, %v520_v51  ;;  %v521_v57 = vmax.f32 %v483_v52, 0.0  ;;  %v485_v58 = vadd.f32 %v484_v54, %v1107_v41  ;;  %609 = vadd.xlane.f32.xlu0 %v581_v53  ;;  %v702_v53 = vsub.s32 %v699_v39, %v1098_v36 }
 0x1d0   :  { %v488_v59 = vpop.f32.mrf.mxu1 }
 0x1d1   :  { %v522_v60 = vmax.f32 %v485_v58, 0.0  ;;  %v489_v61 = vadd.f32 %v488_v59, %v1105_v40  ;;  %v582_v62 = vadd.f32 %v564_v56, %v563_v55  ;;  %v565_v0 = vmul.f32 %v1114_v48, %v521_v57 }
 0x1d2   :  { %v490_v63 = vpop.f32.mrf.mxu1  ;;  %v713_v56 = vadd.s32 4294967224, %v1181_v9  ;;  %v709_v59 = vsub.s32 %v706_v47, %v1098_v36 }
 0x1d3   :  { %v566_v1 = vmul.f32 %v1116_v49, %v522_v60  ;;  %v523_v2 = vmax.f32 %v489_v61, 0.0  ;;  %v491_v3 = vadd.f32 %v490_v63, %v1107_v41  ;;  %611 = vadd.xlane.f32.xlu1 %v582_v62  ;;  %v664_v41 = vadd.s32 4294967280, %v1181_v9 }
 0x1d4   :  { %v720_v63 = vadd.s32 4294967216, %v1181_v9 }
 0x1d5   :  { %v524_v4 = vmax.f32 %v491_v3, 0.0  ;;  %v583_v5 = vadd.f32 %v566_v1, %v565_v0  ;;  %v567_v6 = vmul.f32 %v1114_v48, %v523_v2  ;;  %v1189_v48 = vstv %s1245_s6  ;;  %s949_s6 = smov [#allocation8]  }
 0x1d6   :  { %v667_v35 = vsub.s32 %v664_v41, %v1098_v36  ;;  %v716_v1 = vsub.s32 %v713_v56, %v1098_v36  ;;  %s770_s22 = sshll.u32 %s949_s6, 4  ;;  %s771_s22 = int_to_ptr.vmem [resolvable:$true] %s770_s22 }
 0x1d7   :  { %v568_v7 = vmul.f32 %v1116_v49, %v524_v4  ;;  %613 = vadd.xlane.f32.xlu0 %v583_v5  ;;  %v660_v49 = vsub.s32 %v657_v11, %v1098_v36  ;;  %v727_v5 = vadd.s32 4294967208, %v1181_v9  ;;  %v741_v11 = vadd.s32 4294967192, %v1181_v9  ;;  %s918_s23 = scalar_lea.vmem %s771_s22, 16  ;;  %s922_s24 = scalar_lea.vmem %s771_s22, 32 }
 0x1d8   :  { %p919_p10 = scmp.ne.s32.totalorder %s771_s22, %s918_s23  ;;  %p923_p11 = scmp.lt.s32.totalorder %s771_s22, %s771_s22 }
 0x1d9   :  { %v584_v8 = vadd.f32 %v568_v7, %v567_v6  ;;  %v723_v7 = vsub.s32 %v720_v63, %v1098_v36  ;;  %p924_p12 = scmp.lt.s32.totalorder %s922_s24, %s918_s23 }
 0x1db   :  { %615 = vadd.xlane.f32.xlu1 %v584_v8  ;;  %p925_p13 = por %p924_p12, %p923_p11 }
 0x1dd   :  { %p926_p0 = pnand %p925_p13, %p919_p10 }
 0x238   :  { %v586_v40 = vpop.xlane.xlu0 %585 }
 0x239   :  { %v619_v19 = vadd.f32 %v1189_v48, %v586_v40  ;;  %v734_v40 = vadd.s32 4294967200, %v1181_v9 }
 0x23b   :  { %v656_v30 = vrot.slane %v619_v19, %v655_v18  ;;  %v744_v19 = vsub.s32 %v741_v11, %v1098_v36 }
 0x23c   :  { %v588_v12 = vpop.xlane.xlu0 %587 }
 0x23d   :  { %v620_v15 = vadd.f32 %v1189_v48, %v588_v12 }
 0x23f   :  { %v661_v25 = vrot.slane %v620_v15, %v660_v49  ;;  %v730_v49 = vsub.s32 %v727_v5, %v1098_v36 }
 0x240   :  { %v590_v10 = vpop.xlane.xlu1 %589 }
 0x241   :  { %v621_v16 = vadd.f32 %v1189_v48, %v590_v10  ;;  %v663_v38 = vsel %vm662_vm1, %v661_v25, %v656_v30 }
 0x243   :  { %v668_v26 = vrot.slane %v621_v16, %v667_v35  ;;  %v737_v16 = vsub.s32 %v734_v40, %v1098_v36 }
 0x244   :  { %v600_v13 = vpop.xlane.xlu1 %599 }
 0x245   :  { %v670_v42 = vsel %vm669_vm2, %v668_v26, %v663_v38  ;;  %v626_v54 = vadd.f32 %v1189_v48, %v600_v13  ;;  %v748_v13 = vadd.s32 4294967184, %v1181_v9 }
 0x247   :  { %v703_v0 = vrot.slane %v626_v54, %v702_v53 }
 0x248   :  { %v592_v21 = vpop.xlane.xlu1 %591  ;;  %v594_v22 = vpop.xlane.xlu0 %593 }
 0x249   :  { %v622_v24 = vadd.f32 %v1189_v48, %v592_v21  ;;  %v623_v28 = vadd.f32 %v1189_v48, %v594_v22  ;;  %v755_v21 = vadd.s32 4294967176, %v1181_v9  ;;  %v751_v22 = vsub.s32 %v748_v13, %v1098_v36 }
 0x24b   :  { %v675_v31 = vrot.slane %v622_v24, %v674_v20  ;;  %v682_v43 = vrot.slane %v623_v28, %v681_v27  ;;  %v758_v29 = vsub.s32 %v755_v21, %v1098_v36 }
 0x24c   :  { %v596_v33 = vpop.xlane.xlu1 %595  ;;  %v602_v34 = vpop.xlane.xlu0 %601 }
 0x24d   :  { %v624_v37 = vadd.f32 %v1189_v48, %v596_v33  ;;  %v677_v45 = vsel %vm676_vm3, %v675_v31, %v670_v42  ;;  %v627_v61 = vadd.f32 %v1189_v48, %v602_v34 }
 0x24e   :  { %v684_v55 = vsel %vm683_vm4, %v682_v43, %v677_v45 }
 0x24f   :  { %v689_v46 = vrot.slane %v624_v37, %v688_v32  ;;  %v710_v6 = vrot.slane %v627_v61, %v709_v59 }
 0x250   :  { %v598_v50 = vpop.xlane.xlu0 %597  ;;  %v604_v51 = vpop.xlane.xlu1 %603 }
 0x251   :  { %v625_v52 = vadd.f32 %v1189_v48, %v598_v50  ;;  %v691_v58 = vsel %vm690_vm5, %v689_v46, %v684_v55  ;;  %v628_v3 = vadd.f32 %v1189_v48, %v604_v51 }
 0x253   :  { %v696_v57 = vrot.slane %v625_v52, %v695_v44  ;;  %v717_v14 = vrot.slane %v628_v3, %v716_v1 }
 0x254   :  { %v606_v60 = vpop.xlane.xlu0 %605  ;;  %v608_v2 = vpop.xlane.xlu1 %607 }
 0x255   :  { %v698_v62 = vsel %vm697_vm6, %v696_v57, %v691_v58  ;;  %v629_v8 = vadd.f32 %v1189_v48, %v606_v60  ;;  %v630_v15 = vadd.f32 %v1189_v48, %v608_v2 }
 0x256   :  { %v705_v4 = vsel %vm704_vm7, %v703_v0, %v698_v62 }
 0x257   :  { %v712_v12 = vsel %vm711_vm8, %v710_v6, %v705_v4  ;;  %v724_v35 = vrot.slane %v629_v8, %v723_v7  ;;  %v731_v24 = vrot.slane %v630_v15, %v730_v49 }
 0x258   :  { %v610_v10 = vpop.xlane.xlu0 %609  ;;  %v719_v18 = vsel %vm718_vm9, %v717_v14, %v712_v12 }
 0x259   :  { %v631_v17 = vadd.f32 %v1189_v48, %v610_v10  ;;  %v726_v26 = vsel %vm725_vm10, %v724_v35, %v719_v18 }
 0x25a   :  { %v733_v32 = vsel %vm732_vm11, %v731_v24, %v726_v26 }
 0x25b   :  { %v738_v27 = vrot.slane %v631_v17, %v737_v16 }
 0x25c   :  { %v612_v41 = vpop.xlane.xlu1 %611 }
 0x25d   :  { %v632_v20 = vadd.f32 %v1189_v48, %v612_v41  ;;  %v740_v9 = vsel %vm739_vm12, %v738_v27, %v733_v32 }
 0x25f   :  { %v745_v28 = vrot.slane %v632_v20, %v744_v19 }
 0x260   :  { %v614_v23 = vpop.xlane.xlu0 %613 }
 0x261   :  { %v633_v25 = vadd.f32 %v1189_v48, %v614_v23  ;;  %v747_v34 = vsel %vm746_vm13, %v745_v28, %v740_v9 }
 0x263   :  { %v752_v30 = vrot.slane %v633_v25, %v751_v22 }
 0x264   :  { %v616_v31 = vpop.xlane.xlu1 %615 }
 0x265   :  { %v634_v33 = vadd.f32 %v1189_v48, %v616_v31  ;;  %v754_v38 = vsel %vm753_vm14, %v752_v30, %v747_v34 }
 0x267   :  { %v759_v37 = vrot.slane %v634_v33, %v758_v29 }
 0x269   :  { %v761_v39 = vsel %vm760_vm15, %v759_v37, %v754_v38 }
 0x26a   :  { %763 = vst [vmem:[#allocation8] sm:$0x1] %v761_v39 }
 0x26b   :  { %929 = shalt.err (!%p926_p0)
}
 0x26c   :  { %773 = dma.vmem_to_hbm [thread:$0]  %s771_s22, 16, %s1246_s7, [#allocation5]  }
 0x26d   :  { %942 = dma.done.wait [#allocation5], 16  }
 0x26e   :  { %943 = vsyncadd [#allocation5], 4294967280 }
 0x26f   :  { %777 = vsyncpa [#allocation4], 1 }
 0x270   :  { %778 = vsyncpa [#allocation7], 1 }
 0x271   :  { %779 = vsyncpa [#allocation5], 1 }

</bundles_post_ra>
